<compile_context>
chip_gen: v6e
topology: v6e:2x2x1
jax: 0.10.0
libtpu: 0.0.40
codegen_flags: <defaults>
</compile_context>

<pallas_src>
import jax
import jax.numpy as jnp
from jax import lax
from jax.experimental import pallas as pl
from jax.experimental.pallas import tpu as pltpu

_INV_SQRT2 = 0.7071067811865476  # hoisted GELU constant


# ---------------------------------------------------------------------------
# kernels
# ---------------------------------------------------------------------------
def _geglu_kernel_fused(x_ref, w_ref, b_ref, o_ref, acc_ref):
    # x_ref : (tm, tk)      input row tile
    # w_ref : (tk, 2*tn)    [value | gate] weight tile (columns pre-permuted)
    # b_ref : (1, 2*tn)     [value | gate] bias tile
    # o_ref : (tm, tn)      output tile (resident across the k axis)
    # acc_ref: (tm, 2*tn)   f32 accumulator
    k = pl.program_id(2)

    @pl.when(k == 0)
    def _():
        acc_ref[...] = jnp.zeros_like(acc_ref)

    acc_ref[...] += jnp.dot(x_ref[...], w_ref[...],
                            preferred_element_type=jnp.float32)

    @pl.when(k == pl.num_programs(2) - 1)
    def _():
        tn = o_ref.shape[1]
        y = acc_ref[...] + b_ref[...].astype(jnp.float32)
        h = y[:, :tn]          # lane-aligned slice (tn is a 128 multiple here)
        g = y[:, tn:]
        gelu_g = 0.5 * g * (1.0 + lax.erf(g * _INV_SQRT2))
        o_ref[...] = (h * gelu_g).astype(o_ref.dtype)


def _geglu_kernel_split(x_ref, wx_ref, wg_ref, bx_ref, bg_ref, o_ref,
                        acc_h, acc_g):
    # Fallback for small / 128-unaligned dim_out: two separate halves so every
    # block equals the full array dims (no in-kernel unaligned lane slicing).
    k = pl.program_id(2)

    @pl.when(k == 0)
    def _():
        acc_h[...] = jnp.zeros_like(acc_h)
        acc_g[...] = jnp.zeros_like(acc_g)

    x = x_ref[...]
    acc_h[...] += jnp.dot(x, wx_ref[...], preferred_element_type=jnp.float32)
    acc_g[...] += jnp.dot(x, wg_ref[...], preferred_element_type=jnp.float32)

    @pl.when(k == pl.num_programs(2) - 1)
    def _():
        h = acc_h[...] + bx_ref[...].astype(jnp.float32)
        g = acc_g[...] + bg_ref[...].astype(jnp.float32)
        gelu_g = 0.5 * g * (1.0 + lax.erf(g * _INV_SQRT2))
        o_ref[...] = (h * gelu_g).astype(o_ref.dtype)


# ---------------------------------------------------------------------------
# tiling helpers
# ---------------------------------------------------------------------------
def _round_up(v, m):
    return (v + m - 1) // m * m


def _pick_tile(dim, candidates):
    for c in candidates:
        if dim % c == 0:
            return c
    return dim


def _sublane_multiple(dtype):
    # min sublane packing for the dtype (f32:8, bf16/f16:16, int8/fp8:32)
    return {4: 8, 2: 16, 1: 32}.get(jnp.dtype(dtype).itemsize, 8)


def _choose_k(dim_in):
    """Return (padded K, tk).  Never let a huge unaligned dim_in become a
    single tile (that would blow past v7x's 64 MiB VMEM)."""
    if dim_in <= 512:
        return dim_in, dim_in
    for tk in (512, 256, 128):
        if dim_in % tk == 0:
            return dim_in, tk
    # Large, unaligned K: zero-pad to a 256 multiple (zero rows/cols add 0).
    return _round_up(dim_in, 256), 256


def _choose_tm(M, tm_pref, sub, fits):
    """Largest row tile that (a) fits the VMEM budget, (b) is a sublane
    multiple, and (c) divides M exactly when possible (no padded rows)."""
    if M <= 256:
        c = _round_up(M, sub)
        while c > sub and not fits(c):
            c = _round_up(c // 2, sub)
        return max(c, sub)
    cands = [c for c in (1024, 512, 256, 128)
             if c <= tm_pref and c % sub == 0 and fits(c)]
    if not cands:
        cands = [max(sub, 128)]
    for c in cands:                       # largest exact divisor first
        if M % c == 0:
            return c
    # Ragged M: least wasted (zero-padded) rows wins; prefer larger tile on tie.
    return min(cands, key=lambda c: (_round_up(M, c) - M, -c))


# ---------------------------------------------------------------------------
# wrapper
# ---------------------------------------------------------------------------
def geglu(x, w, b, *, tm=None):
    """x: (B, N, dim_in); w: (dim_in, 2*dim_out); b: (2*dim_out,)."""
    B, N, dim_in = x.shape
    dim_out = w.shape[1] // 2
    M = B * N
    itemsize = jnp.dtype(x.dtype).itemsize
    sub = _sublane_multiple(x.dtype)

    if tm is None:
        tm = 1024 if itemsize <= 2 else 512   # bigger row tiles for narrow dtypes

    aligned = (dim_out % 128 == 0)

    # ---- lane (dim_out) tiling: 256-multiples preferred (v6e/v7x MXU), 384 dropped.
    tn = _pick_tile(dim_out, (512, 256, 128)) if aligned else dim_out

    # ---- contraction (dim_in) tiling (zero-pads K only for large unaligned dims).
    Kp, tk = _choose_k(dim_in)

    # ---- row tiling with an explicit VMEM budget (v7x: 64 MiB physical).
    ncols = 2 * tn
    def _vmem_bytes(tm_):
        return (tm_ * tk * itemsize * 2          # x tile, double-buffered
                + tk * ncols * itemsize * 2      # weight tile(s)
                + tm_ * tn * itemsize * 2        # output tile
                + tm_ * ncols * 4                # f32 accumulator(s)
                + ncols * 4 * 4)                 # biases
    VMEM_BUDGET = 44 << 20                       # headroom under the 56 MiB limit
    tm_eff = _choose_tm(M, tm, sub, lambda c: _vmem_bytes(c) <= VMEM_BUDGET)
    Mp = _round_up(M, tm_eff)

    x2d = x.reshape(M, dim_in)
    if Mp != M or Kp != dim_in:
        x2d = jnp.pad(x2d, ((0, Mp - M), (0, Kp - dim_in)))

    nm, nk = Mp // tm_eff, Kp // tk
    nn_blocks = dim_out // tn
    # NOTE(v7x): with 2 TCs, nm*nn_blocks >= 2 keeps both cores busy; for
    # transformer-scale M this holds automatically with tm<=1024.

    out_spec = pl.BlockSpec((tm_eff, tn), lambda i, j, k: (i, j))
    x_spec = pl.BlockSpec((tm_eff, tk), lambda i, j, k: (i, k))

    if aligned:
        # Fused wide dot: one (tk, 2*tn) weight block per step.
        if nn_blocks > 1:
            # One-time static-weight column permutation so block j's value and
            # gate columns are adjacent: (K, [v0..v_{n-1}, g0..g_{n-1}]) ->
            # (K, [v0,g0, v1,g1, ...]).
            wf = (w.reshape(dim_in, 2, nn_blocks, tn)
                   .transpose(0, 2, 1, 3)
                   .reshape(dim_in, 2 * dim_out))
            bf = (b.reshape(2, nn_blocks, tn)
                   .transpose(1, 0, 2)
                   .reshape(1, 2 * dim_out))
        else:
            wf = w                                  # already [value | gate]
            bf = b.reshape(1, 2 * dim_out)
        if Kp != dim_in:
            wf = jnp.pad(wf, ((0, Kp - dim_in), (0, 0)))
        kernel = _geglu_kernel_fused
        in_specs = [
            x_spec,
            # NOTE: add pipeline_mode=pl.Buffered(3) here only if the per-k
            # weight DMA is still exposed after the larger tm (profile first).
            pl.BlockSpec((tk, 2 * tn), lambda i, j, k: (k, j)),
            pl.BlockSpec((1, 2 * tn), lambda i, j, k: (0, j)),
        ]
        scratch = [pltpu.VMEM((tm_eff, 2 * tn), jnp.float32)]
        args = (x2d, wf, bf)
    else:
        # Small / unaligned dim_out: one-time wrapper split, full-array blocks.
        wx = w[:, :dim_out]
        wg = w[:, dim_out:]
        if Kp != dim_in:
            wx = jnp.pad(wx, ((0, Kp - dim_in), (0, 0)))
            wg = jnp.pad(wg, ((0, Kp - dim_in), (0, 0)))
        bx = b[:dim_out].reshape(1, dim_out)
        bg = b[dim_out:].reshape(1, dim_out)
        kernel = _geglu_kernel_split
        in_specs = [
            x_spec,
            pl.BlockSpec((tk, tn), lambda i, j, k: (k, j)),
            pl.BlockSpec((tk, tn), lambda i, j, k: (k, j)),
            pl.BlockSpec((1, tn), lambda i, j, k: (0, j)),
            pl.BlockSpec((1, tn), lambda i, j, k: (0, j)),
        ]
        scratch = [pltpu.VMEM((tm_eff, tn), jnp.float32),
                   pltpu.VMEM((tm_eff, tn), jnp.float32)]
        args = (x2d, wx, wg, bx, bg)

    cost = pl.CostEstimate(
        flops=2 * Mp * Kp * (2 * dim_out) + 10 * Mp * dim_out,
        transcendentals=Mp * dim_out,
        bytes_accessed=(Mp * Kp * itemsize
                        + nm * Kp * 2 * dim_out * itemsize   # weight re-streamed per M tile
                        + 2 * dim_out * itemsize
                        + Mp * dim_out * itemsize),
    )

    out2d = pl.pallas_call(
        kernel,
        out_shape=jax.ShapeDtypeStruct((Mp, dim_out), x.dtype),
        grid_spec=pltpu.PrefetchScalarGridSpec(
            num_scalar_prefetch=0,
            grid=(nm, nn_blocks, nk),
            in_specs=in_specs,
            out_specs=out_spec,
            scratch_shapes=scratch,
        ),
        compiler_params=pltpu.CompilerParams(
            dimension_semantics=("parallel", "parallel", "arbitrary"),
            vmem_limit_bytes=56 * 1024 * 1024,   # <= v7x 64 MiB with headroom
        ),
        cost_estimate=cost,
    )(*args)

    if Mp != M:
        out2d = out2d[:M]
    return out2d.reshape(B, N, dim_out)


# ---------------------------------------------------------------------------
# reference & tests
# ---------------------------------------------------------------------------
def geglu_ref(x, w, b):
    """Pure-JAX reference matching the PyTorch module."""
    y = jnp.einsum("bnd,de->bne", x, w) + b
    dim_out = w.shape[1] // 2
    h, g = y[..., :dim_out], y[..., dim_out:]
    return h * (0.5 * g * (1.0 + lax.erf(g / jnp.sqrt(2.0))))


def _make_inputs(key, B, N, dim_in, dim_out, dtype=jnp.float32):
    kx, kw, kb = jax.random.split(key, 3)
    x = jax.random.normal(kx, (B, N, dim_in), dtype=dtype)
    bound = 1.0 / jnp.sqrt(dim_in)
    # nn.Linear(dim_in, dim_out*2): stored transposed as (dim_in, 2*dim_out).
    w = jax.random.uniform(kw, (dim_in, 2 * dim_out), dtype, -bound, bound)
    b = jax.random.uniform(kb, (2 * dim_out,), dtype, -bound, bound)
    return x, w, b


if __name__ == "__main__":
    key = jax.random.PRNGKey(0)
    k1, k2, k3 = jax.random.split(key, 3)

    # Test 1: small unaligned dims (split-weight fallback path).
    B, N, dim_in, dim_out = 2, 8, 32, 32
    x, w, b = _make_inputs(k1, B, N, dim_in, dim_out)
    out = geglu(x, w, b)
    jax.block_until_ready(out)
    ref = geglu_ref(x, w, b)
    assert out.shape == (B, N, dim_out)
    assert jnp.allclose(out, ref, atol=1e-5, rtol=1e-5), "mismatch (small case)"

    # Test 2: 128-aligned dims, single lane block (fused wide-dot, no reorder).
    B2, N2, di2, do2 = 2, 64, 128, 256
    x2, w2, b2 = _make_inputs(k2, B2, N2, di2, do2)
    out2 = geglu(x2, w2, b2)
    jax.block_until_ready(out2)
    ref2 = geglu_ref(x2, w2, b2)
    assert out2.shape == (B2, N2, do2)
    assert jnp.allclose(out2, ref2, atol=1e-4, rtol=1e-4), "mismatch (aligned case)"

    # Test 3: multiple lane blocks (exercises the one-time weight permutation).
    B3, N3, di3, do3 = 2, 64, 128, 384
    x3, w3, b3 = _make_inputs(k3, B3, N3, di3, do3)
    out3 = geglu(x3, w3, b3)
    jax.block_until_ready(out3)
    ref3 = geglu_ref(x3, w3, b3)
    assert out3.shape == (B3, N3, do3)
    assert jnp.allclose(out3, ref3, atol=1e-4, rtol=1e-4), "mismatch (permuted case)"

    print("KERNEL_OK")
</pallas_src>

<mosaic_0001>
module attributes {stable_mosaic.version = 11 : i64} {
  func.func @_geglu_kernel_split(%arg0: i32, %arg1: i32, %arg2: i32, %arg3: memref<16x32xf32, #tpu.memory_space<vmem>>, %arg4: memref<32x32xf32, #tpu.memory_space<vmem>>, %arg5: memref<32x32xf32, #tpu.memory_space<vmem>>, %arg6: memref<1x32xf32, #tpu.memory_space<vmem>>, %arg7: memref<1x32xf32, #tpu.memory_space<vmem>>, %arg8: memref<16x32xf32, #tpu.memory_space<vmem>>, %arg9: memref<16x32xf32, #tpu.memory_space<vmem>>, %arg10: memref<16x32xf32, #tpu.memory_space<vmem>>) attributes {dimension_semantics = [#tpu.dimension_semantics<parallel>, #tpu.dimension_semantics<parallel>, #tpu.dimension_semantics<arbitrary>], iteration_bounds = array<i64: 1, 1, 1>, scalar_prefetch = 0 : i64, scratch_operands = 2 : i64, tpu.core_type = #tpu.core_type<tc>, window_params = [{transform_indices = @transform_0, window_bounds = array<i64: 16, 32>}, {transform_indices = @transform_1, window_bounds = array<i64: 32, 32>}, {transform_indices = @transform_2, window_bounds = array<i64: 32, 32>}, {transform_indices = @transform_3, window_bounds = array<i64: 1, 32>}, {transform_indices = @transform_4, window_bounds = array<i64: 1, 32>}, {transform_indices = @transform_5, window_bounds = array<i64: 16, 32>}]} {
    %c0_i32 = arith.constant 0 : i32
    %0 = arith.cmpi eq, %arg2, %c0_i32 : i32
    %1 = arith.extui %0 : i1 to i32
    %c0_i32_0 = arith.constant 0 : i32
    %2 = arith.cmpi ne, %1, %c0_i32_0 : i32
    scf.if %2 {
      %cst_17 = arith.constant 0.000000e+00 : f32
      %17 = vector.broadcast %cst_17 : f32 to vector<16x32xf32>
      %c0_18 = arith.constant 0 : index
      %c0_19 = arith.constant 0 : index
      %18 = vector.load %arg9[%c0_18, %c0_19] : memref<16x32xf32, #tpu.memory_space<vmem>>, vector<16x32xf32>
      tpu.vector_store %arg9[%c0_18, %c0_19], %17 {strides = array<i32>} : memref<16x32xf32, #tpu.memory_space<vmem>>, vector<16x32xf32>,
      %cst_20 = arith.constant 0.000000e+00 : f32
      %19 = vector.broadcast %cst_20 : f32 to vector<16x32xf32>
      %c0_21 = arith.constant 0 : index
      %c0_22 = arith.constant 0 : index
      %20 = vector.load %arg10[%c0_21, %c0_22] : memref<16x32xf32, #tpu.memory_space<vmem>>, vector<16x32xf32>
      tpu.vector_store %arg10[%c0_21, %c0_22], %19 {strides = array<i32>} : memref<16x32xf32, #tpu.memory_space<vmem>>, vector<16x32xf32>,
    } else {
    }
    %c0 = arith.constant 0 : index
    %c0_1 = arith.constant 0 : index
    %3 = vector.load %arg3[%c0, %c0_1] : memref<16x32xf32, #tpu.memory_space<vmem>>, vector<16x32xf32>
    %c0_2 = arith.constant 0 : index
    %c0_3 = arith.constant 0 : index
    %4 = vector.load %arg9[%c0_2, %c0_3] : memref<16x32xf32, #tpu.memory_space<vmem>>, vector<16x32xf32>
    %c0_4 = arith.constant 0 : index
    %c0_5 = arith.constant 0 : index
    %5 = vector.load %arg4[%c0_4, %c0_5] : memref<32x32xf32, #tpu.memory_space<vmem>>, vector<32x32xf32>
    %cst = arith.constant dense<0.000000e+00> : vector<16x32xf32>
    %6 = tpu.matmul %3, %5, %cst {dimension_numbers = #tpu.dot_dimension_numbers<[1], [0], [0], [1], [0, 0, 1, 1], [], []>} : vector<16x32xf32>, vector<32x32xf32>, vector<16x32xf32> -> vector<16x32xf32>
    %7 = arith.addf %4, %6 : vector<16x32xf32>
    %c0_6 = arith.constant 0 : index
    %c0_7 = arith.constant 0 : index
    %8 = vector.load %arg9[%c0_6, %c0_7] : memref<16x32xf32, #tpu.memory_space<vmem>>, vector<16x32xf32>
    tpu.vector_store %arg9[%c0_6, %c0_7], %7 {strides = array<i32>} : memref<16x32xf32, #tpu.memory_space<vmem>>, vector<16x32xf32>,
    %c0_8 = arith.constant 0 : index
    %c0_9 = arith.constant 0 : index
    %9 = vector.load %arg10[%c0_8, %c0_9] : memref<16x32xf32, #tpu.memory_space<vmem>>, vector<16x32xf32>
    %c0_10 = arith.constant 0 : index
    %c0_11 = arith.constant 0 : index
    %10 = vector.load %arg5[%c0_10, %c0_11] : memref<32x32xf32, #tpu.memory_space<vmem>>, vector<32x32xf32>
    %cst_12 = arith.constant dense<0.000000e+00> : vector<16x32xf32>
    %11 = tpu.matmul %3, %10, %cst_12 {dimension_numbers = #tpu.dot_dimension_numbers<[1], [0], [0], [1], [0, 0, 1, 1], [], []>} : vector<16x32xf32>, vector<32x32xf32>, vector<16x32xf32> -> vector<16x32xf32>
    %12 = arith.addf %9, %11 : vector<16x32xf32>
    %c0_13 = arith.constant 0 : index
    %c0_14 = arith.constant 0 : index
    %13 = vector.load %arg10[%c0_13, %c0_14] : memref<16x32xf32, #tpu.memory_space<vmem>>, vector<16x32xf32>
    tpu.vector_store %arg10[%c0_13, %c0_14], %12 {strides = array<i32>} : memref<16x32xf32, #tpu.memory_space<vmem>>, vector<16x32xf32>,
    %c0_i32_15 = arith.constant 0 : i32
    %14 = arith.cmpi eq, %arg2, %c0_i32_15 : i32
    %15 = arith.extui %14 : i1 to i32
    %c0_i32_16 = arith.constant 0 : i32
    %16 = arith.cmpi ne, %15, %c0_i32_16 : i32
    scf.if %16 {
      %c0_17 = arith.constant 0 : index
      %c0_18 = arith.constant 0 : index
      %17 = vector.load %arg9[%c0_17, %c0_18] : memref<16x32xf32, #tpu.memory_space<vmem>>, vector<16x32xf32>
      %c0_19 = arith.constant 0 : index
      %c0_20 = arith.constant 0 : index
      %18 = vector.load %arg6[%c0_19, %c0_20] : memref<1x32xf32, #tpu.memory_space<vmem>>, vector<1x32xf32>
      %19 = vector.broadcast %18 : vector<1x32xf32> to vector<16x32xf32>
      %20 = arith.addf %17, %19 : vector<16x32xf32>
      %c0_21 = arith.constant 0 : index
      %c0_22 = arith.constant 0 : index
      %21 = vector.load %arg10[%c0_21, %c0_22] : memref<16x32xf32, #tpu.memory_space<vmem>>, vector<16x32xf32>
      %c0_23 = arith.constant 0 : index
      %c0_24 = arith.constant 0 : index
      %22 = vector.load %arg7[%c0_23, %c0_24] : memref<1x32xf32, #tpu.memory_space<vmem>>, vector<1x32xf32>
      %23 = vector.broadcast %22 : vector<1x32xf32> to vector<16x32xf32>
      %24 = arith.addf %21, %23 : vector<16x32xf32>
      %cst_25 = arith.constant 5.000000e-01 : f32
      %25 = vector.broadcast %cst_25 : f32 to vector<16x32xf32>
      %26 = arith.mulf %25, %24 : vector<16x32xf32>
      %cst_26 = arith.constant 0.707106769 : f32
      %27 = vector.broadcast %cst_26 : f32 to vector<16x32xf32>
      %28 = arith.mulf %24, %27 : vector<16x32xf32>
      %29 = math.erf %28 : vector<16x32xf32>
      %cst_27 = arith.constant 1.000000e+00 : f32
      %30 = vector.broadcast %cst_27 : f32 to vector<16x32xf32>
      %31 = arith.addf %30, %29 : vector<16x32xf32>
      %32 = arith.mulf %26, %31 : vector<16x32xf32>
      %33 = arith.mulf %20, %32 : vector<16x32xf32>
      %c0_28 = arith.constant 0 : index
      %c0_29 = arith.constant 0 : index
      %34 = vector.load %arg8[%c0_28, %c0_29] : memref<16x32xf32, #tpu.memory_space<vmem>>, vector<16x32xf32>
      tpu.vector_store %arg8[%c0_28, %c0_29], %33 {strides = array<i32>} : memref<16x32xf32, #tpu.memory_space<vmem>>, vector<16x32xf32>,
    } else {
    }
    return
  }
  func.func @transform_0(%arg0: i32, %arg1: i32, %arg2: i32) -> (i32, i32) {
    %c0_i32 = arith.constant 0 : i32
    return %arg0, %arg2 : i32, i32
  }
  func.func @transform_1(%arg0: i32, %arg1: i32, %arg2: i32) -> (i32, i32) {
    %c0_i32 = arith.constant 0 : i32
    return %arg2, %arg1 : i32, i32
  }
  func.func @transform_2(%arg0: i32, %arg1: i32, %arg2: i32) -> (i32, i32) {
    %c0_i32 = arith.constant 0 : i32
    return %arg2, %arg1 : i32, i32
  }
  func.func @transform_3(%arg0: i32, %arg1: i32, %arg2: i32) -> (i32, i32) {
    %c0_i32 = arith.constant 0 : i32
    %c0_i32_0 = arith.constant 0 : i32
    return %c0_i32, %arg1 : i32, i32
  }
  func.func @transform_4(%arg0: i32, %arg1: i32, %arg2: i32) -> (i32, i32) {
    %c0_i32 = arith.constant 0 : i32
    %c0_i32_0 = arith.constant 0 : i32
    return %c0_i32, %arg1 : i32, i32
  }
  func.func @transform_5(%arg0: i32, %arg1: i32, %arg2: i32) -> (i32, i32) {
    %c0_i32 = arith.constant 0 : i32
    return %arg0, %arg1 : i32, i32
  }
}

</mosaic_0001>

<bundles_post_ra>
// kernel: tpu_custom_call.1
= control target key start
LH: loop header
LB: loop body
LE: loop exit
PB: predicated region body
PF: predicated region fallthrough
CT: control target
= control target key end

     0   :  { %10 = vsyncpa [#allocation5], 0  ;;  %s525_s0 = inlined_call_operand.hbm [shape: f32[16,32], index: 0, kind: input, shape index: {}]   ;;  %s526_s1 = inlined_call_operand.hbm [shape: f32[32,32], index: 1, kind: input, shape index: {}]   ;;  %s527_s2 = inlined_call_operand.hbm [shape: f32[32,32], index: 2, kind: input, shape index: {}]   ;;  %s528_s3 = inlined_call_operand.vmem [shape: f32[1,32], index: 3, kind: input, shape index: {}]   ;;  %s529_s4 = inlined_call_operand.vmem [shape: f32[1,32], index: 4, kind: input, shape index: {}]   ;;  %s530_s5 = inlined_call_operand.hbm [shape: f32[16,32], index: 5, kind: output, shape index: {}]  }
   0x1   :  { %11 = vsyncpa [#allocation8], 0 }
   0x2   :  { %12 = vsyncpa [#allocation6], 0  ;;  %s444_s18 = smov [#allocation7]   ;;  %s445_s20 = smov [#allocation4]  }
   0x3   :  { %s30_s19 = sshll.u32 %s444_s18, 4  ;;  %s18_s21 = sshll.u32 %s445_s20, 4  ;;  %s31_s19 = int_to_ptr.vmem [resolvable:$true] %s30_s19  ;;  %s19_s21 = int_to_ptr.vmem [resolvable:$true] %s18_s21 }
   0x4   :  { %s366_s22 = scalar_lea.vmem %s31_s19, 512  ;;  %p371_p1 = scmp.lt.s32.totalorder %s31_s19, %s31_s19 }
   0x5   :  { %p367_p0 = scmp.ne.s32.totalorder %s31_s19, %s366_s22  ;;  %p372_p2 = scmp.lt.s32.totalorder %s366_s22, %s366_s22 }
   0x7   :  { %p373_p3 = por %p372_p2, %p371_p1 }
   0x9   :  { %p374_p4 = pnand %p373_p3, %p367_p0 }
   0xb   :  { %377 = shalt.err (!%p374_p4)
}
   0xc   :  { %s446_s23 = smov 128   ;;  %s447_s24 = smov 8  }
   0xd   :  { %36 = dma.hbm_to_vmem [thread:$0]  %s526_s1, 512, %s31_s19, [#allocation8], %s446_s23, %s446_s23, %s447_s24  }
   0xe   :  { %s386_s27 = scalar_lea.vmem %s19_s21, 256  ;;  %p391_p6 = scmp.lt.s32.totalorder %s19_s21, %s19_s21 }
   0xf   :  { %p387_p5 = scmp.ne.s32.totalorder %s19_s21, %s386_s27  ;;  %p392_p7 = scmp.lt.s32.totalorder %s386_s27, %s386_s27 }
  0x11   :  { %p393_p8 = por %p392_p7, %p391_p6 }
  0x13   :  { %p394_p9 = pnand %p393_p8, %p387_p5 }
  0x15   :  { %397 = shalt.err (!%p394_p9)
}
  0x16   :  { %24 = dma.hbm_to_vmem [thread:$0]  %s525_s0, 256, %s19_s21, [#allocation5], %s446_s23, %s446_s23, %s447_s24  }
  0x17   :  { %s448_s30 = smov [#allocation9]  }
  0x18   :  { %s42_s6 = sshll.u32 %s448_s30, 4  ;;  %s43_s6 = int_to_ptr.vmem [resolvable:$true] %s42_s6 }
  0x19   :  { %s406_s7 = scalar_lea.vmem %s43_s6, 512  ;;  %p411_p11 = scmp.lt.s32.totalorder %s43_s6, %s43_s6 }
  0x1a   :  { %p407_p10 = scmp.ne.s32.totalorder %s43_s6, %s406_s7  ;;  %p412_p12 = scmp.lt.s32.totalorder %s406_s7, %s406_s7 }
  0x1c   :  { %p413_p13 = por %p412_p12, %p411_p11 }
  0x1e   :  { %p414_p0 = pnand %p413_p13, %p407_p10 }
  0x20   :  { %417 = shalt.err (!%p414_p0)
}
  0x21   :  { %48 = dma.hbm_to_vmem [thread:$0]  %s527_s2, 512, %s43_s6, [#allocation8], %s446_s23, %s446_s23, %s447_s24  }
  0x22   :  { %438 = dma.done.wait [#allocation5], 256  }
  0x23   :  { %439 = vsyncadd [#allocation5], 4294967040 }
  0x24   :  { %440 = dma.done.wait [#allocation8], 1024  }
  0x25   :  { %441 = vsyncadd [#allocation8], 4294966272  ;;  %vm66_vm0 = vcmask 261120   ;;  %v449_v0 = vmov 0.0   ;;  %v170_v1 = vld [vmem:[#allocation9 + $0x18] sm:$0xff]  ;;  %v169_v2 = vld [vmem:[#allocation9 + $0x10] sm:$0xff] }
  0x26   :  { %70 = vst.msk [vmem:[#allocation3 + $0x8] sm:$0xff] %vm66_vm0, %v449_v0  ;;  %67 = vst.msk [vmem:[#allocation2] sm:$0xff] %vm66_vm0, %v449_v0  ;;  %336 = vmatprep.subr.mxu1 %v170_v1  ;;  %v71_v3 = vld [vmem:[#allocation4] sm:$0xff]  ;;  %v168_v4 = vld [vmem:[#allocation9 + $0x8] sm:$0xff] }
  0x27   :  { %68 = vst.msk [vmem:[#allocation2 + $0x8] sm:$0xff] %vm66_vm0, %v449_v0  ;;  %69 = vst.msk [vmem:[#allocation3] sm:$0xff] %vm66_vm0, %v449_v0  ;;  %337 = vmatpush3.msra.mxu1 %v170_v1  ;;  %344 = vmatprep.mubr.msk.f32.mxu1 %vm66_vm0, %v71_v3  ;;  %v78_v5 = vld [vmem:[#allocation7 + $0x18] sm:$0xff]  ;;  %v77_v6 = vld [vmem:[#allocation7 + $0x10] sm:$0xff] }
  0x28   :  { %338 = vmatprep.subr.mxu1 %v169_v2  ;;  %325 = vmatprep.subr.mxu0 %v78_v5  ;;  %v167_v7 = vld [vmem:[#allocation9] sm:$0xff]  ;;  %v76_v8 = vld [vmem:[#allocation7 + $0x8] sm:$0xff]  ;;  %v72_v9 = vld [vmem:[#allocation4 + $0x8] sm:$0xff] }
  0x29   :  { %339 = vmatpush3.msra.mxu1 %v169_v2  ;;  %326 = vmatpush3.msra.mxu0 %v78_v5  ;;  %v75_v10 = vld [vmem:[#allocation7] sm:$0xff]  ;;  %v312_v23 = vld [vmem:[%s529_s4] ss:$0 sm:$0xff]  ;;  %s450_s4 = smov [#allocation10]  }
  0x2a   :  { %340 = vmatprep.subr.mxu1 %v168_v4  ;;  %327 = vmatprep.subr.mxu0 %v77_v6  ;;  %v311_v31 = vld [vmem:[%s528_s3] ss:$0 sm:$0xff]  ;;  %s294_s11 = sshll.u32 %s450_s4, 4  ;;  %s295_s11 = int_to_ptr.vmem [resolvable:$true] %s294_s11 }
  0x2b   :  { %341 = vmatpush3.msra.mxu1 %v168_v4  ;;  %328 = vmatpush3.msra.mxu0 %v77_v6  ;;  %s418_s3 = scalar_lea.vmem %s295_s11, 256  ;;  %p423_p2 = scmp.lt.s32.totalorder %s295_s11, %s295_s11 }
  0x2c   :  { %342 = vmatprep.subr.mxu1 %v167_v7  ;;  %329 = vmatprep.subr.mxu0 %v76_v8  ;;  %p419_p1 = scmp.ne.s32.totalorder %s295_s11, %s418_s3  ;;  %p424_p3 = scmp.lt.s32.totalorder %s418_s3, %s418_s3 }
  0x2d   :  { %343 = vmatpush3.msra.mxu1 %v167_v7  ;;  %330 = vmatpush3.msra.mxu0 %v76_v8  ;;  %v166_v11 = vld [vmem:[#allocation3 + $0x8] sm:$0xff]  ;;  %v73_v18 = vld [vmem:[#allocation2] sm:$0xff] }
  0x2e   :  { %345 = vmatmul.mubr.msk.f32.vlgmr.msra.gmra.mxu1 %vm66_vm0, %v72_v9  ;;  %331 = vmatprep.subr.mxu0 %v75_v10  ;;  %v165_v13 = vld [vmem:[#allocation3] sm:$0xff]  ;;  %v74_v14 = vld [vmem:[#allocation2 + $0x8] sm:$0xff]  ;;  %p425_p4 = por %p424_p3, %p423_p2 }
  0x2f   :  { %332 = vmatpush3.msra.mxu0 %v75_v10  ;;  %333 = vmatprep.mubr.msk.f32.mxu0 %vm66_vm0, %v71_v3 }
  0x30   :  { %334 = vmatmul.mubr.msk.f32.vlgmr.msra.gmra.mxu0 %vm66_vm0, %v72_v9  ;;  %p426_p5 = pnand %p425_p4, %p419_p1 }
  0xee   :  { %v346_v12 = vpop.f32.mrf.mxu1 }
  0xef   :  { %v247_v15 = vadd.f32 %v346_v12, %v166_v11 }
  0xf0   :  { %v237_v16 = vpop.f32.mrf.mxu1  ;;  %v335_v17 = vpop.f32.mrf.mxu0 }
  0xf1   :  { %249 = vst.msk [vmem:[#allocation3 + $0x8] sm:$0xff] %vm66_vm0, %v247_v15  ;;  %v246_v19 = vadd.f32 %v237_v16, %v165_v13  ;;  %v162_v20 = vadd.f32 %v335_v17, %v74_v14 }
  0xf2   :  { %v152_v21 = vpop.f32.mrf.mxu0 }
  0xf3   :  { %248 = vst.msk [vmem:[#allocation3] sm:$0xff] %vm66_vm0, %v246_v19  ;;  %164 = vst.msk [vmem:[#allocation2 + $0x8] sm:$0xff] %vm66_vm0, %v162_v20  ;;  %v161_v22 = vadd.f32 %v152_v21, %v73_v18 }
  0xf5   :  { %163 = vst.msk [vmem:[#allocation2] sm:$0xff] %vm66_vm0, %v161_v22 }
  0xf8   :  { %v265_v24 = vld [vmem:[#allocation3 + $0x8] sm:$0xff] }
  0xf9   :  { %v274_v25 = vadd.f32 %v312_v23, %v265_v24 }
  0xfa   :  { %v264_v26 = vld [vmem:[#allocation3] sm:$0xff]  ;;  %v254_v30 = vld [vmem:[#allocation2 + $0x8] sm:$0xff] }
  0xfb   :  { %v273_v27 = vadd.f32 %v312_v23, %v264_v26  ;;  %v278_v28 = vmul.f32 0.70710677, %v274_v25  ;;  %v263_v33 = vadd.f32 %v311_v31, %v254_v30  ;;  %v276_v34 = vmul.f32 0.5, %v274_v25 }
  0xfc   :  { %v253_v37 = vld [vmem:[#allocation2] sm:$0xff] }
  0xfd   :  { %v277_v29 = vmul.f32 0.70710677, %v273_v27  ;;  %354 = verf.f32 %v278_v28  ;;  %v275_v38 = vmul.f32 0.5, %v273_v27  ;;  %v262_v41 = vadd.f32 %v311_v31, %v253_v37 }
  0xff   :  { %356 = verf.f32 %v277_v29 }
 0x10a   :  { %v355_v32 = vpop.eup %354 }
 0x10b   :  { %v282_v35 = vadd.f32 1.0, %v355_v32 }
 0x10c   :  { %v357_v36 = vpop.eup %356 }
 0x10d   :  { %v281_v39 = vadd.f32 1.0, %v357_v36  ;;  %v284_v40 = vmul.f32 %v282_v35, %v276_v34 }
 0x10f   :  { %v283_v42 = vmul.f32 %v281_v39, %v275_v38  ;;  %v286_v43 = vmul.f32 %v284_v40, %v263_v33 }
 0x111   :  { %v285_v44 = vmul.f32 %v283_v42, %v262_v41  ;;  %288 = vst.msk [vmem:[#allocation10 + $0x8] sm:$0xff] %vm66_vm0, %v286_v43 }
 0x113   :  { %287 = vst.msk [vmem:[#allocation10] sm:$0xff] %vm66_vm0, %v285_v44 }
 0x114   :  { %429 = shalt.err (!%p426_p5)
}
 0x115   :  { %300 = dma.vmem_to_hbm [thread:$0]  %s295_s11, 256, %s530_s5, [#allocation6], %s446_s23, %s446_s23, %s447_s24  }
 0x116   :  { %442 = dma.done.wait [#allocation6], 256  }
 0x117   :  { %443 = vsyncadd [#allocation6], 4294967040 }
 0x118   :  { %304 = vsyncpa [#allocation5], 1 }
 0x119   :  { %305 = vsyncpa [#allocation8], 1 }
 0x11a   :  { %306 = vsyncpa [#allocation6], 1 }

</bundles_post_ra>
